<compile_context>
chip_gen: v5e
topology: v5e:2x2
jax: 0.10.0
libtpu: 0.0.40
codegen_flags: <defaults>
</compile_context>

<pallas_src>
import numpy as np
import jax
import jax.numpy as jnp
from jax.experimental import pallas as pl
from jax.experimental.pallas import tpu as pltpu

VMEM_SPEC = pl.BlockSpec(memory_space=pltpu.MemorySpace.VMEM)
LANE = 128


# ---------------------------------------------------------------------------
# Fused kernel (built per static network shape)
# ---------------------------------------------------------------------------
def make_fused_kernel(B, E, node_counts):
    """node_counts = [N_leaf, N_layer1, ..., N_root] (all static)."""
    num_layers = len(node_counts) - 1

    def kernel(x_ref, w_ref, adj_ref, cls_ref, bias_ref, o_ref):
        # bias_ref: (num_layers+1, L_pad). Row i (<num_layers): fused Linear+BN bias
        #           in cols [:E]. Row num_layers: classifier bias in cols [:num_labels].
        bias = bias_ref[...]

        def pooled_logits(h3, n_nodes, chunk):
            # Node-sum as a batched MXU matmul against a ones row (no cross-sublane
            # XLU reduce), then straight into the pre-scaled classifier chunk
            # (mean-pool 1/N already folded into cls_ref[chunk] by the wrapper).
            ones = jnp.ones((B, 1, n_nodes), jnp.float32)
            s = jnp.einsum('bon,bne->boe', ones, h3,
                           preferred_element_type=jnp.float32)[:, 0, :]      # (B, E)
            return jnp.dot(s, cls_ref[chunk],
                           preferred_element_type=jnp.float32)               # (B, L_pad)

        h = x_ref[...]                                        # (B, N0, E)
        logits = pooled_logits(h, node_counts[0], 0)          # leaf-layer contribution

        for i in range(num_layers):
            n_in, n_out = node_counts[i], node_counts[i + 1]
            a = adj_ref[i][:n_out, :n_in]                     # shared 0/1 adjacency
            w_t = w_ref[i]                                    # (E, E) = (W * bn_scale).T
            b_eff = bias[i, :E]                               # (E,)  = b*scale + shift
            # (A @ x) @ W^T == A @ (x @ W^T): Linear first as one flat 2-D MXU matmul
            # (bias deferred until after aggregation).
            y = jnp.dot(h.reshape(B * n_in, E), w_t,
                        preferred_element_type=jnp.float32).reshape(B, n_in, E)
            # child -> parent aggregation: shared adjacency broadcast over the batch,
            # one batched MXU matmul (O(B), replaces the old O(B^2) block-diag kron).
            agg = jnp.einsum('bmn,bne->bme',
                             jnp.broadcast_to(a, (B, n_out, n_in)), y,
                             preferred_element_type=jnp.float32)
            h = jnp.maximum(agg + b_eff, 0.0)                 # bias (+BN shift) + ReLU
            logits = logits + pooled_logits(h, n_out, i + 1)

        # Dropout(0.5) is identity in eval mode; add the classifier bias row.
        o_ref[...] = logits + bias[num_layers][None, :]

    return kernel


# ---------------------------------------------------------------------------
# One-time host-side (numpy) preparation
# ---------------------------------------------------------------------------
def prepare_constants(params, n_leaf):
    """Fold eval-mode BN into the Linear, pre-transpose weights, stack per-layer
    constants into slabs, split/scale/pad the classifier (1/N_i folded per chunk).
    Pure numpy: runs once at model-construction time, never on the hot path."""
    layers = params['layers']
    num_layers = len(layers)
    cls_w = np.asarray(params['cls_w'], np.float32)
    cls_b = np.asarray(params['cls_b'], np.float32)
    num_labels, z_dim = cls_w.shape
    E = z_dim // (num_layers + 1)
    l_pad = ((num_labels + LANE - 1) // LANE) * LANE

    node_counts = [n_leaf]
    w_list, b_list, adj_list = [], [], []
    for layer in layers:
        adj = np.asarray(layer['adj'], np.float32)
        assert adj.shape[1] == node_counts[-1], \
            "adjacency columns must match previous layer node count"
        W = np.asarray(layer['lin_w'], np.float32)
        b = np.asarray(layer['lin_b'], np.float32)
        scale = (np.asarray(layer['bn_gamma'], np.float32) /
                 np.sqrt(np.asarray(layer['bn_var'], np.float32) + 1e-5))
        shift = (np.asarray(layer['bn_beta'], np.float32) -
                 np.asarray(layer['bn_mean'], np.float32) * scale)
        w_list.append((W * scale[:, None]).T)                 # (E, E)
        b_list.append(b * scale + shift)                      # (E,)
        adj_list.append(adj)
        node_counts.append(adj.shape[0])

    w_slab = np.stack(w_list).astype(np.float32)              # (L, E, E)

    max_out = max(a.shape[0] for a in adj_list)
    max_in = max(a.shape[1] for a in adj_list)
    adj_slab = np.zeros((num_layers, max_out, max_in), np.float32)
    for i, a in enumerate(adj_list):
        adj_slab[i, :a.shape[0], :a.shape[1]] = a

    # Classifier chunks: transposed, scaled by 1/N_i (folds the mean-pool),
    # lane-padded so the kernel's logits store is a lane-dense (B, 128k) slab.
    cls_slab = np.zeros((num_layers + 1, E, l_pad), np.float32)
    for i in range(num_layers + 1):
        cls_slab[i, :, :num_labels] = cls_w[:, i * E:(i + 1) * E].T / float(node_counts[i])

    bias_slab = np.zeros((num_layers + 1, l_pad), np.float32)
    for i in range(num_layers):
        bias_slab[i, :E] = b_list[i]
    bias_slab[num_layers, :num_labels] = cls_b

    return dict(w_slab=w_slab, adj_slab=adj_slab, cls_slab=cls_slab,
                bias_slab=bias_slab, node_counts=node_counts,
                num_labels=num_labels, l_pad=l_pad, E=E)


def make_tree_isomorphism_network(params, batch, n_leaf):
    """Build a jitted forward: node_embeddings (B, N_leaf, E) -> logits (B, num_labels)."""
    c = prepare_constants(params, n_leaf)
    E, l_pad, num_labels = c['E'], c['l_pad'], c['num_labels']
    node_counts = c['node_counts']
    w_slab = jnp.asarray(c['w_slab'])
    adj_slab = jnp.asarray(c['adj_slab'])
    cls_slab = jnp.asarray(c['cls_slab'])
    bias_slab = jnp.asarray(c['bias_slab'])

    fused = pl.pallas_call(
        make_fused_kernel(batch, E, node_counts),
        out_shape=jax.ShapeDtypeStruct((batch, l_pad), jnp.float32),
        in_specs=[VMEM_SPEC] * 5,
        out_specs=VMEM_SPEC,
    )

    @jax.jit
    def forward(node_embeddings):
        logits_pad = fused(node_embeddings, w_slab, adj_slab, cls_slab, bias_slab)
        return logits_pad[:, :num_labels]

    return forward


# ---------------------------------------------------------------------------
# Pure-JAX reference (for tolerance check)
# ---------------------------------------------------------------------------
def reference_forward(node_embeddings, params):
    x = node_embeddings
    pooled = [jnp.mean(x, axis=1)]
    for layer in params['layers']:
        agg = jnp.einsum('mn,bne->bme', layer['adj'], x)
        h = jnp.einsum('bme,fe->bmf', agg, layer['lin_w']) + layer['lin_b']
        scale = layer['bn_gamma'] / jnp.sqrt(layer['bn_var'] + 1e-5)
        shift = layer['bn_beta'] - layer['bn_mean'] * scale
        x = jnp.maximum(h * scale + shift, 0.0)
        pooled.append(jnp.mean(x, axis=1))
    z = jnp.concatenate(pooled, axis=-1)
    return z @ params['cls_w'].T + params['cls_b']


# ---------------------------------------------------------------------------
# Deterministic parameter construction
# ---------------------------------------------------------------------------
def build_adj_matrix(edges):
    num_rows = max(r for r, _ in edges) + 1
    num_cols = max(c for _, c in edges) + 1
    A = np.zeros((num_rows, num_cols), dtype=np.float32)
    for r, c in edges:
        A[r, c] = 1.0
    return jnp.asarray(A)


def init_linear(key, fan_in, fan_out):
    k1, k2 = jax.random.split(key)
    bound = 1.0 / np.sqrt(fan_in)
    W = jax.random.uniform(k1, (fan_out, fan_in), minval=-bound, maxval=bound,
                           dtype=jnp.float32)
    b = jax.random.uniform(k2, (fan_out,), minval=-bound, maxval=bound,
                           dtype=jnp.float32)
    return W, b


def init_params(key, tree_edges, embedding_size, num_labels):
    layers = []
    num_mlps = len(tree_edges) - 1
    for i in range(num_mlps):
        key, k_lin, k_g, k_b, k_m, k_v = jax.random.split(key, 6)
        W, b = init_linear(k_lin, embedding_size, embedding_size)
        layers.append(dict(
            adj=build_adj_matrix(tree_edges[i + 1]),
            lin_w=W, lin_b=b,
            bn_gamma=1.0 + 0.1 * jax.random.normal(k_g, (embedding_size,), jnp.float32),
            bn_beta=0.1 * jax.random.normal(k_b, (embedding_size,), jnp.float32),
            bn_mean=0.1 * jax.random.normal(k_m, (embedding_size,), jnp.float32),
            bn_var=1.0 + 0.1 * jax.random.uniform(k_v, (embedding_size,), jnp.float32),
        ))
    key, k_cls = jax.random.split(key)
    cls_w, cls_b = init_linear(k_cls, embedding_size * (num_mlps + 1), num_labels)
    return dict(layers=layers, cls_w=cls_w, cls_b=cls_b)


# ---------------------------------------------------------------------------
# Main
# ---------------------------------------------------------------------------
if __name__ == "__main__":
    embedding_size = 32
    num_labels = 5
    batch = 2

    # Tree: 8 leaves -> 4 parents -> 2 roots (edges[0] only fixes the layer count).
    tree_edges = [
        [(0, 0), (0, 1)],
        [(0, 0), (0, 1), (0, 2), (0, 3), (1, 4), (1, 5), (2, 6), (2, 7), (3, 6)],
        [(0, 0), (0, 1), (1, 2), (1, 3)],
    ]
    n_leaves = 8

    key = jax.random.PRNGKey(0)
    key, k_params, k_x = jax.random.split(key, 3)
    params = init_params(k_params, tree_edges, embedding_size, num_labels)
    node_embeddings = jax.random.normal(k_x, (batch, n_leaves, embedding_size),
                                        dtype=jnp.float32)

    # Prep runs once (numpy, off the hot path); forward is one jitted pallas_call.
    forward = make_tree_isomorphism_network(params, batch, n_leaves)
    logits = jax.block_until_ready(forward(node_embeddings))
    assert logits.shape == (batch, num_labels)
    assert bool(jnp.all(jnp.isfinite(logits)))

    # Tolerance check against pure-JAX reference (BN-fold / reassociation / pooled
    # classifier accumulation change rounding order only).
    ref = jax.block_until_ready(reference_forward(node_embeddings, params))
    np.testing.assert_allclose(np.asarray(logits), np.asarray(ref),
                               rtol=2e-4, atol=2e-4)
    print("KERNEL_OK")
</pallas_src>

<mosaic_0001>
module attributes {stable_mosaic.version = 11 : i64} {
  func.func @kernel(%arg0: memref<2x8x32xf32, #tpu.memory_space<vmem>>, %arg1: memref<2x32x32xf32, #tpu.memory_space<vmem>>, %arg2: memref<2x4x8xf32, #tpu.memory_space<vmem>>, %arg3: memref<3x32x128xf32, #tpu.memory_space<vmem>>, %arg4: memref<3x128xf32, #tpu.memory_space<vmem>>, %arg5: memref<2x128xf32, #tpu.memory_space<vmem>>) attributes {dimension_semantics = [], scalar_prefetch = 0 : i64, scratch_operands = 0 : i64, tpu.core_type = #tpu.core_type<tc>} {
    %c0 = arith.constant 0 : index
    %c0_0 = arith.constant 0 : index
    %0 = vector.load %arg4[%c0, %c0_0] : memref<3x128xf32, #tpu.memory_space<vmem>>, vector<3x128xf32>
    %c0_1 = arith.constant 0 : index
    %c0_2 = arith.constant 0 : index
    %c0_3 = arith.constant 0 : index
    %1 = vector.load %arg0[%c0_1, %c0_2, %c0_3] : memref<2x8x32xf32, #tpu.memory_space<vmem>>, vector<2x8x32xf32>
    %cst = arith.constant 1.000000e+00 : f32
    %2 = vector.broadcast %cst : f32 to vector<2x1x8xf32>
    "tpu.trace_start"() <{level = 10 : i32, message = "bon,bne->boe"}> : () -> ()
    %cst_4 = arith.constant dense<0.000000e+00> : vector<2x1x32xf32>
    %3 = tpu.matmul %2, %1, %cst_4 {dimension_numbers = #tpu.dot_dimension_numbers<[2], [1], [1], [2], [0, 0, 0, 1, 1, 2], [0], [0]>} : vector<2x1x8xf32>, vector<2x8x32xf32>, vector<2x1x32xf32> -> vector<2x1x32xf32>
    "tpu.trace_stop"() : () -> ()
    %4 = vector.shape_cast %3 : vector<2x1x32xf32> to vector<2x32xf32>
    %c0_5 = arith.constant 0 : index
    %c0_6 = arith.constant 0 : index
    %c0_7 = arith.constant 0 : index
    %5 = vector.load %arg3[%c0_5, %c0_6, %c0_7] : memref<3x32x128xf32, #tpu.memory_space<vmem>>, vector<1x32x128xf32>
    %6 = vector.shape_cast %5 : vector<1x32x128xf32> to vector<32x128xf32>
    %cst_8 = arith.constant dense<0.000000e+00> : vector<2x128xf32>
    %7 = tpu.matmul %4, %6, %cst_8 {dimension_numbers = #tpu.dot_dimension_numbers<[1], [0], [0], [1], [0, 0, 1, 1], [], []>} : vector<2x32xf32>, vector<32x128xf32>, vector<2x128xf32> -> vector<2x128xf32>
    %c0_9 = arith.constant 0 : index
    %c0_10 = arith.constant 0 : index
    %c0_11 = arith.constant 0 : index
    %8 = vector.load %arg2[%c0_9, %c0_10, %c0_11] : memref<2x4x8xf32, #tpu.memory_space<vmem>>, vector<1x4x8xf32>
    %9 = vector.shape_cast %8 : vector<1x4x8xf32> to vector<4x8xf32>
    %c0_12 = arith.constant 0 : index
    %c0_13 = arith.constant 0 : index
    %c0_14 = arith.constant 0 : index
    %10 = vector.load %arg1[%c0_12, %c0_13, %c0_14] : memref<2x32x32xf32, #tpu.memory_space<vmem>>, vector<1x32x32xf32>
    %11 = vector.shape_cast %10 : vector<1x32x32xf32> to vector<32x32xf32>
    %12 = vector.extract_strided_slice %0 {offsets = [0, 0], sizes = [1, 32], strides = [1, 1]} : vector<3x128xf32> to vector<1x32xf32>
    %13 = vector.shape_cast %12 : vector<1x32xf32> to vector<32xf32>
    %14 = vector.shape_cast %1 : vector<2x8x32xf32> to vector<16x32xf32>
    %cst_15 = arith.constant dense<0.000000e+00> : vector<16x32xf32>
    %15 = tpu.matmul %14, %11, %cst_15 {dimension_numbers = #tpu.dot_dimension_numbers<[1], [0], [0], [1], [0, 0, 1, 1], [], []>} : vector<16x32xf32>, vector<32x32xf32>, vector<16x32xf32> -> vector<16x32xf32>
    %16 = vector.shape_cast %15 : vector<16x32xf32> to vector<2x8x32xf32>
    %17 = vector.shape_cast %9 : vector<4x8xf32> to vector<1x4x8xf32>
    %18 = vector.broadcast %17 : vector<1x4x8xf32> to vector<2x4x8xf32>
    "tpu.trace_start"() <{level = 10 : i32, message = "bmn,bne->bme"}> : () -> ()
    %cst_16 = arith.constant dense<0.000000e+00> : vector<2x4x32xf32>
    %19 = tpu.matmul %18, %16, %cst_16 {dimension_numbers = #tpu.dot_dimension_numbers<[2], [1], [1], [2], [0, 0, 0, 1, 1, 2], [0], [0]>} : vector<2x4x8xf32>, vector<2x8x32xf32>, vector<2x4x32xf32> -> vector<2x4x32xf32>
    "tpu.trace_stop"() : () -> ()
    %20 = vector.shape_cast %13 : vector<32xf32> to vector<1x1x32xf32>
    %21 = vector.broadcast %20 : vector<1x1x32xf32> to vector<2x4x32xf32>
    %22 = arith.addf %19, %21 : vector<2x4x32xf32>
    %cst_17 = arith.constant 0.000000e+00 : f32
    %23 = vector.broadcast %cst_17 : f32 to vector<2x4x32xf32>
    %24 = arith.maximumf %22, %23 : vector<2x4x32xf32>
    %cst_18 = arith.constant 1.000000e+00 : f32
    %25 = vector.broadcast %cst_18 : f32 to vector<2x1x4xf32>
    "tpu.trace_start"() <{level = 10 : i32, message = "bon,bne->boe"}> : () -> ()
    %cst_19 = arith.constant dense<0.000000e+00> : vector<2x1x32xf32>
    %26 = tpu.matmul %25, %24, %cst_19 {dimension_numbers = #tpu.dot_dimension_numbers<[2], [1], [1], [2], [0, 0, 0, 1, 1, 2], [0], [0]>} : vector<2x1x4xf32>, vector<2x4x32xf32>, vector<2x1x32xf32> -> vector<2x1x32xf32>
    "tpu.trace_stop"() : () -> ()
    %27 = vector.shape_cast %26 : vector<2x1x32xf32> to vector<2x32xf32>
    %c1 = arith.constant 1 : index
    %c0_20 = arith.constant 0 : index
    %c0_21 = arith.constant 0 : index
    %28 = vector.load %arg3[%c1, %c0_20, %c0_21] : memref<3x32x128xf32, #tpu.memory_space<vmem>>, vector<1x32x128xf32>
    %29 = vector.shape_cast %28 : vector<1x32x128xf32> to vector<32x128xf32>
    %cst_22 = arith.constant dense<0.000000e+00> : vector<2x128xf32>
    %30 = tpu.matmul %27, %29, %cst_22 {dimension_numbers = #tpu.dot_dimension_numbers<[1], [0], [0], [1], [0, 0, 1, 1], [], []>} : vector<2x32xf32>, vector<32x128xf32>, vector<2x128xf32> -> vector<2x128xf32>
    %31 = arith.addf %7, %30 : vector<2x128xf32>
    %c1_23 = arith.constant 1 : index
    %c0_24 = arith.constant 0 : index
    %c0_25 = arith.constant 0 : index
    %32 = vector.load %arg2[%c1_23, %c0_24, %c0_25] : memref<2x4x8xf32, #tpu.memory_space<vmem>>, vector<1x4x8xf32>
    %33 = vector.shape_cast %32 : vector<1x4x8xf32> to vector<4x8xf32>
    %34 = vector.extract_strided_slice %33 {offsets = [0, 0], sizes = [2, 4], strides = [1, 1]} : vector<4x8xf32> to vector<2x4xf32>
    %c1_26 = arith.constant 1 : index
    %c0_27 = arith.constant 0 : index
    %c0_28 = arith.constant 0 : index
    %35 = vector.load %arg1[%c1_26, %c0_27, %c0_28] : memref<2x32x32xf32, #tpu.memory_space<vmem>>, vector<1x32x32xf32>
    %36 = vector.shape_cast %35 : vector<1x32x32xf32> to vector<32x32xf32>
    %37 = vector.extract_strided_slice %0 {offsets = [1, 0], sizes = [1, 32], strides = [1, 1]} : vector<3x128xf32> to vector<1x32xf32>
    %38 = vector.shape_cast %37 : vector<1x32xf32> to vector<32xf32>
    %39 = vector.shape_cast %24 : vector<2x4x32xf32> to vector<8x32xf32>
    %cst_29 = arith.constant dense<0.000000e+00> : vector<8x32xf32>
    %40 = tpu.matmul %39, %36, %cst_29 {dimension_numbers = #tpu.dot_dimension_numbers<[1], [0], [0], [1], [0, 0, 1, 1], [], []>} : vector<8x32xf32>, vector<32x32xf32>, vector<8x32xf32> -> vector<8x32xf32>
    %41 = vector.shape_cast %40 : vector<8x32xf32> to vector<2x4x32xf32>
    %42 = vector.shape_cast %34 : vector<2x4xf32> to vector<1x2x4xf32>
    %43 = vector.broadcast %42 : vector<1x2x4xf32> to vector<2x2x4xf32>
    "tpu.trace_start"() <{level = 10 : i32, message = "bmn,bne->bme"}> : () -> ()
    %cst_30 = arith.constant dense<0.000000e+00> : vector<2x2x32xf32>
    %44 = tpu.matmul %43, %41, %cst_30 {dimension_numbers = #tpu.dot_dimension_numbers<[2], [1], [1], [2], [0, 0, 0, 1, 1, 2], [0], [0]>} : vector<2x2x4xf32>, vector<2x4x32xf32>, vector<2x2x32xf32> -> vector<2x2x32xf32>
    "tpu.trace_stop"() : () -> ()
    %45 = vector.shape_cast %38 : vector<32xf32> to vector<1x1x32xf32>
    %46 = vector.broadcast %45 : vector<1x1x32xf32> to vector<2x2x32xf32>
    %47 = arith.addf %44, %46 : vector<2x2x32xf32>
    %cst_31 = arith.constant 0.000000e+00 : f32
    %48 = vector.broadcast %cst_31 : f32 to vector<2x2x32xf32>
    %49 = arith.maximumf %47, %48 : vector<2x2x32xf32>
    %cst_32 = arith.constant 1.000000e+00 : f32
    %50 = vector.broadcast %cst_32 : f32 to vector<2x1x2xf32>
    "tpu.trace_start"() <{level = 10 : i32, message = "bon,bne->boe"}> : () -> ()
    %cst_33 = arith.constant dense<0.000000e+00> : vector<2x1x32xf32>
    %51 = tpu.matmul %50, %49, %cst_33 {dimension_numbers = #tpu.dot_dimension_numbers<[2], [1], [1], [2], [0, 0, 0, 1, 1, 2], [0], [0]>} : vector<2x1x2xf32>, vector<2x2x32xf32>, vector<2x1x32xf32> -> vector<2x1x32xf32>
    "tpu.trace_stop"() : () -> ()
    %52 = vector.shape_cast %51 : vector<2x1x32xf32> to vector<2x32xf32>
    %c2 = arith.constant 2 : index
    %c0_34 = arith.constant 0 : index
    %c0_35 = arith.constant 0 : index
    %53 = vector.load %arg3[%c2, %c0_34, %c0_35] : memref<3x32x128xf32, #tpu.memory_space<vmem>>, vector<1x32x128xf32>
    %54 = vector.shape_cast %53 : vector<1x32x128xf32> to vector<32x128xf32>
    %cst_36 = arith.constant dense<0.000000e+00> : vector<2x128xf32>
    %55 = tpu.matmul %52, %54, %cst_36 {dimension_numbers = #tpu.dot_dimension_numbers<[1], [0], [0], [1], [0, 0, 1, 1], [], []>} : vector<2x32xf32>, vector<32x128xf32>, vector<2x128xf32> -> vector<2x128xf32>
    %56 = arith.addf %31, %55 : vector<2x128xf32>
    %57 = vector.extract_strided_slice %0 {offsets = [2, 0], sizes = [1, 128], strides = [1, 1]} : vector<3x128xf32> to vector<1x128xf32>
    %58 = vector.shape_cast %57 : vector<1x128xf32> to vector<128xf32>
    %59 = vector.shape_cast %58 : vector<128xf32> to vector<1x128xf32>
    %60 = vector.broadcast %59 : vector<1x128xf32> to vector<2x128xf32>
    %61 = arith.addf %56, %60 : vector<2x128xf32>
    %c0_37 = arith.constant 0 : index
    %c0_38 = arith.constant 0 : index
    %62 = vector.load %arg5[%c0_37, %c0_38] : memref<2x128xf32, #tpu.memory_space<vmem>>, vector<2x128xf32>
    tpu.vector_store %arg5[%c0_37, %c0_38], %61 {strides = array<i32>} : memref<2x128xf32, #tpu.memory_space<vmem>>, vector<2x128xf32>,
    return
  }
}

</mosaic_0001>

<bundles_post_ra>
// kernel: forward.1
= control target key start
LH: loop header
LB: loop body
LE: loop exit
PB: predicated region body
PF: predicated region fallthrough
CT: control target
= control target key end

     0   :  { %10 = vsyncpa [#allocation3], 0  ;;  %s802_s0 = inlined_call_operand.hbm [shape: f32[2,8,32], index: 0, kind: input, shape index: {}]   ;;  %s803_s1 = inlined_call_operand.hbm [shape: f32[2,32,32], index: 1, kind: input, shape index: {}]   ;;  %s804_s2 = inlined_call_operand.hbm [shape: f32[2,4,8], index: 2, kind: input, shape index: {}]   ;;  %s805_s3 = inlined_call_operand.hbm [shape: f32[3,32,128], index: 3, kind: input, shape index: {}]   ;;  %s806_s4 = inlined_call_operand.hbm [shape: f32[3,128], index: 4, kind: input, shape index: {}]   ;;  %s807_s5 = inlined_call_operand.hbm [shape: f32[2,128], index: 5, kind: output, shape index: {}]  }
   0x1   :  { %11 = vsyncpa [#allocation6], 0 }
   0x2   :  { %12 = vsyncpa [#allocation9], 0 }
   0x3   :  { %13 = vsyncpa [#allocation4], 0  ;;  %s31_s20 = sshll.u32 %s803_s1, 4  ;;  %s711_s21 = smov [#allocation5]   ;;  %s32_s20 = int_to_ptr.hbm [resolvable:$true] %s31_s20 }
   0x4   :  { %s33_s22 = sshll.u32 %s711_s21, 4  ;;  %s57_s25 = sshll.u32 %s805_s3, 4  ;;  %s34_s22 = int_to_ptr.vmem [resolvable:$true] %s33_s22  ;;  %s58_s25 = int_to_ptr.hbm [resolvable:$true] %s57_s25 }
   0x5   :  { %s712_s26 = smov 128   ;;  %s713_s27 = smov 8  }
   0x6   :  { %39 = dma.hbm_to_vmem [thread:$0]  %s32_s20, 1024, %s34_s22, [#allocation6], %s712_s26, %s712_s26, %s713_s27  }
   0x7   :  { %s714_s28 = smov [#allocation8]   ;;  %s18_s7 = sshll.u32 %s802_s0, 4  ;;  %s19_s7 = int_to_ptr.hbm [resolvable:$true] %s18_s7 }
   0x8   :  { %s59_s29 = sshll.u32 %s714_s28, 4  ;;  %s44_s9 = sshll.u32 %s804_s2, 4  ;;  %s60_s29 = int_to_ptr.vmem [resolvable:$true] %s59_s29  ;;  %s45_s9 = int_to_ptr.hbm [resolvable:$true] %s44_s9 }
   0x9   :  { %65 = dma.hbm_to_vmem [thread:$0]  %s58_s25, 1536, %s60_s29, [#allocation9], %s712_s26, %s712_s26, %s713_s27  }
   0xa   :  { %s715_s10 = smov [#allocation2]   ;;  %s716_s3 = smov [#allocation7]  }
   0xb   :  { %s20_s11 = sshll.u32 %s715_s10, 4  ;;  %s46_s12 = sshll.u32 %s716_s3, 4  ;;  %s21_s11 = int_to_ptr.vmem [resolvable:$true] %s20_s11  ;;  %s47_s12 = int_to_ptr.vmem [resolvable:$true] %s46_s12 }
   0xc   :  { %26 = dma.hbm_to_vmem [thread:$0]  %s19_s7, 256, %s21_s11, [#allocation3], %s712_s26, %s712_s26, %s713_s27  }
   0xd   :  { %s717_s13 = smov 64   ;;  %s718_s14 = smov 4  }
   0xe   :  { %52 = dma.hbm_to_vmem [thread:$0]  %s45_s9, 128, %s47_s12, [#allocation6], %s717_s13, %s717_s13, %s718_s14  }
   0xf   :  { %s71_s16 = sshll.u32 %s806_s4, 4  ;;  %s719_s17 = smov [#allocation10]   ;;  %s72_s16 = int_to_ptr.hbm [resolvable:$true] %s71_s16 }
  0x10   :  { %s73_s18 = sshll.u32 %s719_s17, 4  ;;  %s74_s18 = int_to_ptr.vmem [resolvable:$true] %s73_s18 }
  0x11   :  { %76 = dma.hbm_to_vmem [thread:$0]  %s72_s16, 64, %s74_s18, [#allocation9]  }
  0x12   :  { %703 = dma.done.wait [#allocation3], 256  }
  0x13   :  { %704 = vsyncadd [#allocation3], 4294967040 }
  0x14   :  { %705 = dma.done.wait [#allocation6], 1152  }
  0x15   :  { %706 = vsyncadd [#allocation6], 4294966144 }
  0x16   :  { %707 = dma.done.wait [#allocation9], 1600  }
  0x17   :  { %708 = vsyncadd [#allocation9], 4294965696  ;;  %v152_v0 = vld [vmem:[#allocation5 + $0x18] sm:$0xff]  ;;  %v151_v1 = vld [vmem:[#allocation5 + $0x10] sm:$0xff]  ;;  %vm100_vm0 = vcmask 64512   ;;  %v720_v5 = vmov 1.0  }
  0x18   :  { %172 = vmatpush.msra.mxu2 %v152_v0  ;;  %v98_v2 = vld [vmem:[#allocation2] sm:$0xff]  ;;  %v99_v3 = vld [vmem:[#allocation2 + $0x8] sm:$0xff]  ;;  %v150_v4 = vld [vmem:[#allocation5 + $0x8] sm:$0xff]  ;;  %vm153_vm1 = vcmask 261120   ;;  %vm232_vm2 = vcmask 1043456   ;;  %vm229_vm3 = vcmask 31744  }
  0x19   :  { %139 = vmatpush.msra.mxu1 %v99_v3  ;;  %119 = vmatpush.msra.mxu0 %v98_v2  ;;  %v149_v6 = vld [vmem:[#allocation5] sm:$0xff]  ;;  %v775_v11 = vld [vmem:[#allocation10] sm:$0x7]  ;;  %v146_v21 = vld [vmem:[#allocation8 + $0x10] sm:$0xff]  ;;  %vm287_vm4 = vcmask 1041409   ;;  %vm425_vm5 = vcmask 1041408  }
  0x1a   :  { %173 = vmatpush.msra.mxu2 %v151_v1  ;;  %527 = vmatmul.msk.f32.vlgmr.msra.gmra.mxu1 %vm100_vm0, %v720_v5  ;;  %v148_v7 = vld [vmem:[#allocation7] sm:$0xf]  ;;  %v183_v12 = vperm.slane %v775_v11, 0  ;;  %v343_v22 = vld [vmem:[#allocation5 + $0x38] sm:$0xff]  ;;  %v145_v23 = vld [vmem:[#allocation8 + $0x8] sm:$0xff]  ;;  %v372_v45 = vperm.slane %v775_v11, 1 }
  0x1b   :  { %526 = vmatmul.msk.f32.vlgmr.msra.gmra.mxu0 %vm100_vm0, %v720_v5  ;;  %v147_v18 = vld [vmem:[#allocation8 + $0x18] sm:$0xff]  ;;  %v342_v24 = vld [vmem:[#allocation5 + $0x30] sm:$0xff]  ;;  %v144_v26 = vld [vmem:[#allocation8] sm:$0xff]  ;;  %vm422_vm6 = vcmask 15360   ;;  %v504_v60 = vperm.slane %v775_v11, 2  ;;  %s721_s2 = smov [#allocation11]  }
  0x1c   :  { %174 = vmatpush.msra.mxu2 %v150_v4  ;;  %v341_v27 = vld [vmem:[#allocation5 + $0x28] sm:$0xff]  ;;  %v340_v28 = vld [vmem:[#allocation5 + $0x20] sm:$0xff]  ;;  %v282_v32 = vld [vmem:[#allocation8 + $0x30] sm:$0xff]  ;;  %s512_s4 = sshll.u32 %s721_s2, 4  ;;  %s514_s21 = sshll.u32 %s807_s5, 4  ;;  %s513_s4 = int_to_ptr.vmem [resolvable:$true] %s512_s4  ;;  %s515_s21 = int_to_ptr.hbm [resolvable:$true] %s514_s21 }
  0x1d   :  { %v283_v31 = vld [vmem:[#allocation8 + $0x38] sm:$0xff]  ;;  %v281_v33 = vld [vmem:[#allocation8 + $0x28] sm:$0xff]  ;;  %v280_v34 = vld [vmem:[#allocation8 + $0x20] sm:$0xff] }
  0x1e   :  { %175 = vmatpush.msra.mxu2 %v149_v6  ;;  %v338_v41 = vld [vmem:[#allocation7 + $0x4] sm:$0xf]  ;;  %v475_v43 = vld [vmem:[#allocation8 + $0x50] sm:$0xff]  ;;  %v474_v52 = vld [vmem:[#allocation8 + $0x48] sm:$0xff] }
  0x1f   :  { %528 = vmatmul.msk.f32.vlgmr.msra.gmra.mxu2 %vm153_vm1, %v98_v2  ;;  %v476_v42 = vld [vmem:[#allocation8 + $0x58] sm:$0xff]  ;;  %v473_v53 = vld [vmem:[#allocation8 + $0x40] sm:$0xff] }
  0x27   :  { %529 = vmatmul.msk.f32.gmra.mxu2 %vm153_vm1, %v99_v3 }
  0x97   :  { %v141_v20 = vpop.f32.mrf.mxu1 }
  0x98   :  { %v121_v10 = vpop.f32.mrf.mxu0  ;;  %v313_v25 = vrot.slane %v141_v20, 7 }
  0x9a   :  { %v314_v29 = vsel %vm287_vm4, %v313_v25, %v121_v10 }
  0xa2   :  { %v177_v8 = vpop.f32.mrf.mxu2 }
  0xa3   :  { %202 = vmatpush.msra.mxu3 %v177_v8 }
  0xa4   :  { %530 = vmatmul.msk.f32.vlgmr.msra.gmra.mxu3 %vm100_vm0, %v148_v7 }
  0xaa   :  { %v180_v9 = vpop.f32.mrf.mxu2 }
  0xab   :  { %222 = vmatpush.msrb.mxu0 %v180_v9 }
  0xac   :  { %531 = vmatmul.msk.f32.vlgmr.msrb.gmra.mxu0 %vm100_vm0, %v148_v7 }
  0xad   :  { %303 = vmatpush.msra.mxu0 %v283_v31 }
  0xaf   :  { %304 = vmatpush.msra.mxu0 %v282_v32 }
  0xb1   :  { %305 = vmatpush.msra.mxu0 %v281_v33 }
  0xb3   :  { %306 = vmatpush.msra.mxu0 %v280_v34 }
 0x127   :  { %v204_v13 = vpop.f32.mrf.mxu3 }
 0x128   :  { %v205_v14 = vadd.f32 %v204_v13, %v183_v12 }
 0x129   :  { %v224_v15 = vpop.f32.mrf.mxu0 }
 0x12a   :  { %v227_v16 = vmax.f32 %v205_v14, 0.0  ;;  %v225_v17 = vadd.f32 %v224_v15, %v183_v12 }
 0x12c   :  { %344 = vst [vmem:[#allocation1] ss:$2 sm:$0xff] %v227_v16  ;;  %v228_v19 = vmax.f32 %v225_v17, 0.0  ;;  %532 = vmatpush.msk.msrb.mxu1 %vm232_vm2, %v227_v16 }
 0x12d   :  { %533 = vmatmul.msk.f32.vlgmr.msrb.gmra.mxu1 %vm229_vm3, %v720_v5 }
 0x12e   :  { %346 = vst [vmem:[#allocation1 + $0x1] ss:$2 sm:$0xff] %v228_v19  ;;  %534 = vmatpush.msk.msrb.mxu3 %vm232_vm2, %v228_v19  ;;  %329 = vmatpush.msra.mxu1 %v147_v18 }
 0x12f   :  { %535 = vmatmul.msk.f32.vlgmr.msrb.gmra.mxu3 %vm229_vm3, %v720_v5 }
 0x130   :  { %330 = vmatpush.msra.mxu1 %v146_v21  ;;  %362 = vmatpush.msra.mxu3 %v343_v22 }
 0x132   :  { %331 = vmatpush.msra.mxu1 %v145_v23  ;;  %363 = vmatpush.msra.mxu3 %v342_v24 }
 0x134   :  { %332 = vmatpush.msra.mxu1 %v144_v26  ;;  %364 = vmatpush.msra.mxu3 %v341_v27 }
 0x135   :  { %537 = vmatmul.msk.f32.vlgmr.msra.gmra.mxu1 %vm153_vm1, %v314_v29  ;;  %v347_v30 = vld.sshfl [vmem:[#allocation1] sm:$0xff pattern:$0x75316420] }
 0x136   :  { %365 = vmatpush.msra.mxu3 %v340_v28 }
 0x137   :  { %538 = vmatmul.msk.f32.vlgmr.msra.gmra.mxu3 %vm153_vm1, %v347_v30 }
 0x1aa   :  { %v253_v37 = vpop.f32.mrf.mxu1 }
 0x1b2   :  { %v276_v35 = vpop.f32.mrf.mxu3  ;;  %v334_v54 = vpop.f32.mrf.mxu1 }
 0x1b3   :  { %v286_v36 = vrot.slane %v276_v35, 7 }
 0x1b5   :  { %v288_v38 = vsel %vm287_vm4, %v286_v36, %v253_v37 }
 0x1b6   :  { %536 = vmatmul.msk.f32.vlgmr.msra.gmra.mxu0 %vm153_vm1, %v288_v38 }
 0x1ba   :  { %v367_v39 = vpop.f32.mrf.mxu3 }
 0x1bb   :  { %v371_v40 = vrot.slane %v367_v39, 4  ;;  %539 = vmatpush.msk.msrb.mxu2 %vm232_vm2, %v367_v39 }
 0x1bc   :  { %540 = vmatmul.msk.f32.vlgmr.msrb.gmra.mxu2 %vm229_vm3, %v338_v41 }
 0x1bd   :  { %541 = vmatpush.msk.msrb.mxu0 %vm232_vm2, %v371_v40  ;;  %495 = vmatpush.msra.mxu2 %v476_v42 }
 0x1be   :  { %542 = vmatmul.msk.f32.vlgmr.msrb.gmra.mxu0 %vm229_vm3, %v338_v41 }
 0x1bf   :  { %496 = vmatpush.msra.mxu2 %v475_v43 }
 0x1c1   :  { %497 = vmatpush.msra.mxu2 %v474_v52 }
 0x1c3   :  { %498 = vmatpush.msra.mxu2 %v473_v53 }
 0x233   :  { %v308_v44 = vpop.f32.mrf.mxu0 }
 0x234   :  { %v335_v59 = vadd.f32 %v334_v54, %v308_v44 }
 0x23b   :  { %v417_v46 = vpop.f32.mrf.mxu0 }
 0x23c   :  { %v418_v47 = vadd.f32 %v417_v46, %v372_v45 }
 0x23e   :  { %v421_v48 = vmax.f32 %v418_v47, 0.0 }
 0x23f   :  { %v395_v49 = vpop.f32.mrf.mxu2 }
 0x240   :  { %545 = vmatpush.msk.msrb.mxu3 %vm425_vm5, %v421_v48  ;;  %v396_v50 = vadd.f32 %v395_v49, %v372_v45 }
 0x241   :  { %546 = vmatmul.msk.f32.vlgmr.msrb.gmra.mxu3 %vm422_vm6, %v720_v5 }
 0x242   :  { %v420_v51 = vmax.f32 %v396_v50, 0.0 }
 0x244   :  { %543 = vmatpush.msk.msrb.mxu1 %vm425_vm5, %v420_v51 }
 0x245   :  { %544 = vmatmul.msk.f32.vlgmr.msrb.gmra.mxu1 %vm422_vm6, %v720_v5 }
 0x2c2   :  { %v446_v56 = vpop.f32.mrf.mxu1 }
 0x2c4   :  { %v469_v55 = vpop.f32.mrf.mxu3 }
 0x2c5   :  { %v479_v57 = vrot.slane %v469_v55, 7 }
 0x2c7   :  { %v480_v58 = vsel %vm287_vm4, %v479_v57, %v446_v56 }
 0x2c8   :  { %547 = vmatmul.msk.f32.vlgmr.msra.gmra.mxu2 %vm153_vm1, %v480_v58 }
 0x34b   :  { %v500_v61 = vpop.f32.mrf.mxu2 }
 0x34c   :  { %v503_v62 = vadd.f32 %v500_v61, %v335_v59 }
 0x34e   :  { %v505_v63 = vadd.f32 %v504_v60, %v503_v62 }
 0x350   :  { %506 = vst [vmem:[#allocation11] sm:$0x3] %v505_v63 }
 0x351   :  { %517 = dma.vmem_to_hbm [thread:$0]  %s513_s4, 32, %s515_s21, [#allocation4]  }
 0x352   :  { %709 = dma.done.wait [#allocation4], 32  }
 0x353   :  { %710 = vsyncadd [#allocation4], 4294967264 }
 0x354   :  { %522 = vsyncpa [#allocation3], 1 }
 0x355   :  { %523 = vsyncpa [#allocation6], 1 }
 0x356   :  { %524 = vsyncpa [#allocation9], 1 }
 0x357   :  { %525 = vsyncpa [#allocation4], 1 }

</bundles_post_ra>
